<compile_context>
chip_gen: v7x
topology: tpu7x:2x2x1
jax: 0.10.0
libtpu: 0.0.40
codegen_flags: <defaults>
</compile_context>

<pallas_src>
import jax
import jax.numpy as jnp
from jax import lax
from jax.experimental import pallas as pl
from jax.experimental.pallas import tpu as pltpu

EPS = 1e-5  # torch.nn.LayerNorm default


# ----------------------------------------------------------------------------
# Fused kernel: aggregate_xy + n_layers x (Conv1d + LayerNorm + ReLU)
# ----------------------------------------------------------------------------
def _make_fused_kernel(n_layers, TB, C_in, C_out, K, T, pad, c_max, t_store):
    L = TB * t_store

    def kernel(*refs):
        x_ref, aggw_ref, aggb_ref = refs[:3]
        layer_refs = refs[3:3 + 4 * n_layers]
        o_ref = refs[3 + 4 * n_layers]
        act_ref = refs[3 + 4 * n_layers + 1]          # (c_max, TB*t_store) bf16

        # Valid-lane mask for one 256-wide sample segment (first T lanes = 1).
        lane = lax.broadcasted_iota(jnp.int32, (1, t_store), 1)
        mask = (lane < T).astype(jnp.float32)

        # Layer-0 rows must have zero guard lanes (the 'same' padding) before the
        # agg scatter fills the valid lanes.  This is the only zeroing needed:
        # every other row read later is fully rewritten (full 256-wide stores with
        # exact zeros in the guards) earlier in the same grid step.
        act_ref[0:C_in, :] = jnp.zeros((C_in, L), act_ref.dtype)

        # ---- agg_fc: Linear(2, 1) + ReLU over the (x, y) pair (VPU, f32) --------
        x4 = x_ref[...]                                # (TB, C_in, 2, T)
        agg = jnp.maximum(x4[:, :, 0, :] * aggw_ref[0]
                          + x4[:, :, 1, :] * aggw_ref[1]
                          + aggb_ref[0], 0.0)          # (TB, C_in, T) f32
        agg = agg.astype(act_ref.dtype)
        for b in range(TB):                            # once per call, not per layer
            act_ref[0:C_in, b * t_store:b * t_store + T] = agg[b]

        inv_n = 1.0 / float(C_out * T)
        cin = C_in
        for li in range(n_layers):
            w_ref, b_ref, g_ref, be_ref = layer_refs[4 * li:4 * li + 4]

            # Conv1d 'same': K matmuls on the resident bf16 slab; each f32 partial
            # result is rolled by (pad - k) lanes (guard zeros absorb the wrap).
            acts = act_ref[0:cin, :]                   # (cin, L) bf16, loaded once
            conv = None
            for k in range(K):
                part = jnp.dot(w_ref[k], acts,         # (C_out, cin) x (cin, L)
                               preferred_element_type=jnp.float32)
                shift = (pad - k) % L
                if shift:
                    part = pltpu.roll(part, shift=shift, axis=1)
                conv = part if conv is None else conv + part   # (C_out, L) f32

            bias = b_ref[...]                          # (C_out, 1)
            gamma = g_ref[...]                         # (C_out, t_store), 0 in guards
            beta = be_ref[...]                         # (C_out, t_store), 0 in guards
            last = li == n_layers - 1

            # Per-sample LayerNorm((C_out, T)) + ReLU.  All slices are 256-lane
            # aligned views; all stores are full-width unmasked.  TB is the grid
            # batch tile, so this unroll stays bounded at production B.
            for b in range(TB):
                ym = (conv[:, b * t_store:(b + 1) * t_store] + bias) * mask
                s1 = jnp.sum(ym, axis=(0, 1), keepdims=True)
                mu = s1 * inv_n
                cent = (ym - mu) * mask                # centered two-pass stats
                var = jnp.sum(cent * cent, axis=(0, 1), keepdims=True) * inv_n
                out_b = jnp.maximum(cent * lax.rsqrt(var + EPS) * gamma + beta, 0.0)
                # Guard lanes of out_b are exactly 0 (cent, gamma, beta all 0 there),
                # which preserves the padding invariant for the next layer.
                if last:
                    o_ref[b] = out_b                   # (C_out, t_store) f32
                else:
                    act_ref[0:C_out, b * t_store:(b + 1) * t_store] = \
                        out_b.astype(act_ref.dtype)
            cin = C_out

    return kernel


def landmark_conv_forward(x, agg_w, agg_b, layer_params, *, batch_tile=None):
    """x: (B, C_in, 2, T); agg_w: (1, 2); agg_b: (1,);
    layer_params: list of (w (C_out, c_in, K), b (C_out,), gamma (C_out, T), beta (C_out, T))."""
    B, C_in, two, T = x.shape
    assert two == 2
    n_layers = len(layer_params)
    assert n_layers >= 1
    C_out, _, K = layer_params[0][0].shape
    assert K % 2 == 1, "'same' Conv1d into LayerNorm((C,150)) requires odd kernel_size"
    pad = (K - 1) // 2
    c_max = max(C_in, C_out)
    # Lane-dense per-sample stride; >= T + pad so the circular roll wraps only
    # into zero guard lanes.
    t_store = ((T + pad + 127) // 128) * 128

    if batch_tile is None:
        # Bounded batch tile; the grid handles the rest of B.  (On v7x keep this
        # ~half of what fits v5e/v6e VMEM; trivially small at these shapes.)
        batch_tile = max(d for d in range(1, min(B, 8) + 1) if B % d == 0)
    TB = batch_tile
    assert B % TB == 0

    flat = []
    for (w, bb, g, be) in layer_params:
        cin = w.shape[1]
        assert w.shape == (C_out, cin, K)
        # LayerNorm((C_out, 150)) hard-codes the time length (review concern).
        assert g.shape == (C_out, T) and be.shape == (C_out, T)
        wk = jnp.transpose(w, (2, 0, 1)).astype(jnp.bfloat16)      # (K, C_out, cin)
        g_pad = jnp.zeros((C_out, t_store), jnp.float32).at[:, :T].set(g)
        be_pad = jnp.zeros((C_out, t_store), jnp.float32).at[:, :T].set(be)
        flat += [wk, bb.reshape(C_out, 1).astype(jnp.float32), g_pad, be_pad]

    kernel = _make_fused_kernel(n_layers, TB, C_in, C_out, K, T, pad, c_max, t_store)
    vmem = pl.BlockSpec(memory_space=pltpu.MemorySpace.VMEM)
    smem = pl.BlockSpec(memory_space=pltpu.MemorySpace.SMEM)

    out_pad = pl.pallas_call(
        kernel,
        out_shape=jax.ShapeDtypeStruct((B, C_out, t_store), jnp.float32),
        grid=(B // TB,),
        in_specs=[pl.BlockSpec((TB, C_in, 2, T), lambda i: (i, 0, 0, 0)),
                  smem, smem] + [vmem] * (4 * n_layers),
        out_specs=pl.BlockSpec((TB, C_out, t_store), lambda i: (i, 0, 0)),
        scratch_shapes=[
            pltpu.VMEM((c_max, TB * t_store), jnp.bfloat16),   # resident activations
        ],
        compiler_params=pltpu.CompilerParams(
            dimension_semantics=("parallel",)),
    )(x, agg_w.reshape(2).astype(jnp.float32),
      agg_b.reshape(1).astype(jnp.float32), *flat)

    return out_pad[:, :, :T]   # drop the lane-dense guard columns


# ----------------------------------------------------------------------------
# Pure-JAX reference (conv operands rounded to bf16, f32 accumulation -- same
# single-pass MXU precision as the kernel, so the comparison isolates kernel bugs).
# ----------------------------------------------------------------------------
def landmark_conv_reference(x, agg_w, agg_b, layer_params):
    y = jax.nn.relu(x[:, :, 0, :] * agg_w[0, 0]
                    + x[:, :, 1, :] * agg_w[0, 1] + agg_b[0])     # (B, C, T), f32
    for (w, b, g, be) in layer_params:
        K = w.shape[-1]
        pad = (K - 1) // 2
        y = lax.conv_general_dilated(
            y.astype(jnp.bfloat16), w.astype(jnp.bfloat16),
            window_strides=(1,), padding=[(pad, pad)],
            dimension_numbers=("NCH", "OIH", "NCH"),
            preferred_element_type=jnp.float32,
            precision=lax.Precision.HIGHEST)
        y = y + b[None, :, None]
        mu = jnp.mean(y, axis=(1, 2), keepdims=True)
        var = jnp.mean((y - mu) ** 2, axis=(1, 2), keepdims=True)
        y = jax.nn.relu((y - mu) * lax.rsqrt(var + EPS) * g[None] + be[None])
    return y


if __name__ == "__main__":
    B, C_IN, C_OUT, T, K, N_LAYERS = 2, 4, 8, 150, 3, 2   # T=150 fixed by LayerNorm

    keys = jax.random.split(jax.random.PRNGKey(0), 3 + 4 * N_LAYERS)
    x = jax.random.normal(keys[0], (B, C_IN, 2, T), jnp.float32)

    # agg_fc: Linear(2, 1)
    agg_w = 0.7 * jax.random.normal(keys[1], (1, 2), jnp.float32)
    agg_b = 0.1 * jax.random.normal(keys[2], (1,), jnp.float32)

    layer_params = []
    for i in range(N_LAYERS):
        in_c = C_IN if i == 0 else C_OUT
        kw, kb, kg, kbe = keys[3 + 4 * i: 7 + 4 * i]
        w = jax.random.normal(kw, (C_OUT, in_c, K), jnp.float32) / jnp.sqrt(in_c * K)
        b = 0.05 * jax.random.normal(kb, (C_OUT,), jnp.float32)
        gamma = 1.0 + 0.1 * jax.random.normal(kg, (C_OUT, T), jnp.float32)
        beta = 0.05 * jax.random.normal(kbe, (C_OUT, T), jnp.float32)
        layer_params.append((w, b, gamma, beta))

    out = jax.block_until_ready(jax.jit(landmark_conv_forward)(x, agg_w, agg_b, layer_params))
    ref = jax.block_until_ready(jax.jit(landmark_conv_reference)(x, agg_w, agg_b, layer_params))

    assert out.shape == (B, C_OUT, T), out.shape
    # Both paths use bf16 matmul operands with f32 accumulation and centered
    # two-pass LayerNorm stats; 1e-2 covers residual accumulation-order /
    # bf16-rounding divergence across two layers.
    max_err = float(jnp.max(jnp.abs(out - ref)))
    assert jnp.allclose(out, ref, atol=1e-2, rtol=1e-2), max_err

    print("KERNEL_OK")
</pallas_src>

<mosaic_0001>
module attributes {stable_mosaic.version = 11 : i64} {
  func.func @kernel(%arg0: i32, %arg1: memref<2x4x2x150xf32, #tpu.memory_space<vmem>>, %arg2: memref<2xf32, #tpu.memory_space<smem>>, %arg3: memref<1xf32, #tpu.memory_space<smem>>, %arg4: memref<3x8x4xbf16, #tpu.memory_space<vmem>>, %arg5: memref<8x1xf32, #tpu.memory_space<vmem>>, %arg6: memref<8x256xf32, #tpu.memory_space<vmem>>, %arg7: memref<8x256xf32, #tpu.memory_space<vmem>>, %arg8: memref<3x8x8xbf16, #tpu.memory_space<vmem>>, %arg9: memref<8x1xf32, #tpu.memory_space<vmem>>, %arg10: memref<8x256xf32, #tpu.memory_space<vmem>>, %arg11: memref<8x256xf32, #tpu.memory_space<vmem>>, %arg12: memref<2x8x256xf32, #tpu.memory_space<vmem>>, %arg13: memref<8x512xbf16, #tpu.memory_space<vmem>>) attributes {dimension_semantics = [#tpu.dimension_semantics<parallel>], iteration_bounds = array<i64: 1>, scalar_prefetch = 0 : i64, scratch_operands = 1 : i64, tpu.core_type = #tpu.core_type<tc>, window_params = [{transform_indices = @transform_0, window_bounds = array<i64: 2, 4, 2, 150>}, {transform_indices = @transform_1, window_bounds = array<i64: 2>}, {transform_indices = @transform_2, window_bounds = array<i64: 1>}, {pipeline_mode = #tpu.pipeline_mode<synchronous>, transform_indices = @transform_3, window_bounds = array<i64: 3, 8, 4>}, {pipeline_mode = #tpu.pipeline_mode<synchronous>, transform_indices = @transform_4, window_bounds = array<i64: 8, 1>}, {pipeline_mode = #tpu.pipeline_mode<synchronous>, transform_indices = @transform_5, window_bounds = array<i64: 8, 256>}, {pipeline_mode = #tpu.pipeline_mode<synchronous>, transform_indices = @transform_6, window_bounds = array<i64: 8, 256>}, {pipeline_mode = #tpu.pipeline_mode<synchronous>, transform_indices = @transform_7, window_bounds = array<i64: 3, 8, 8>}, {pipeline_mode = #tpu.pipeline_mode<synchronous>, transform_indices = @transform_8, window_bounds = array<i64: 8, 1>}, {pipeline_mode = #tpu.pipeline_mode<synchronous>, transform_indices = @transform_9, window_bounds = array<i64: 8, 256>}, {pipeline_mode = #tpu.pipeline_mode<synchronous>, transform_indices = @transform_10, window_bounds = array<i64: 8, 256>}, {transform_indices = @transform_11, window_bounds = array<i64: 2, 8, 256>}]} {
    %0 = tpu.iota {dimensions = array<i32: 1>} : vector<1x256xi32>
    %c150_i32 = arith.constant 150 : i32
    %1 = vector.broadcast %c150_i32 : i32 to vector<1x256xi32>
    %2 = arith.cmpi slt, %0, %1 : vector<1x256xi32>
    %3 = arith.extui %2 : vector<1x256xi1> to vector<1x256xi32>
    %4 = arith.sitofp %3 : vector<1x256xi32> to vector<1x256xf32>
    %cst = arith.constant 0.000000e+00 : bf16
    %5 = vector.broadcast %cst : bf16 to vector<4x512xbf16>
    %c0 = arith.constant 0 : index
    %c0_0 = arith.constant 0 : index
    %6 = vector.load %arg13[%c0, %c0_0] : memref<8x512xbf16, #tpu.memory_space<vmem>>, vector<4x512xbf16>
    tpu.vector_store %arg13[%c0, %c0_0], %5 {strides = array<i32>} : memref<8x512xbf16, #tpu.memory_space<vmem>>, vector<4x512xbf16>,
    %c0_1 = arith.constant 0 : index
    %c0_2 = arith.constant 0 : index
    %c0_3 = arith.constant 0 : index
    %c0_4 = arith.constant 0 : index
    %7 = vector.load %arg1[%c0_1, %c0_2, %c0_3, %c0_4] : memref<2x4x2x150xf32, #tpu.memory_space<vmem>>, vector<2x4x2x150xf32>
    %8 = vector.extract_strided_slice %7 {offsets = [0, 0, 0, 0], sizes = [2, 4, 1, 150], strides = [1, 1, 1, 1]} : vector<2x4x2x150xf32> to vector<2x4x1x150xf32>
    %9 = vector.shape_cast %8 : vector<2x4x1x150xf32> to vector<2x4x150xf32>
    %c0_5 = arith.constant 0 : index
    %10 = memref.load %arg2[%c0_5] : memref<2xf32, #tpu.memory_space<smem>>
    %11 = vector.broadcast %10 : f32 to vector<2x4x150xf32>
    %12 = arith.mulf %9, %11 : vector<2x4x150xf32>
    %13 = vector.extract_strided_slice %7 {offsets = [0, 0, 1, 0], sizes = [2, 4, 1, 150], strides = [1, 1, 1, 1]} : vector<2x4x2x150xf32> to vector<2x4x1x150xf32>
    %14 = vector.shape_cast %13 : vector<2x4x1x150xf32> to vector<2x4x150xf32>
    %c1 = arith.constant 1 : index
    %15 = memref.load %arg2[%c1] : memref<2xf32, #tpu.memory_space<smem>>
    %16 = vector.broadcast %15 : f32 to vector<2x4x150xf32>
    %17 = arith.mulf %14, %16 : vector<2x4x150xf32>
    %18 = arith.addf %12, %17 : vector<2x4x150xf32>
    %c0_6 = arith.constant 0 : index
    %19 = memref.load %arg3[%c0_6] : memref<1xf32, #tpu.memory_space<smem>>
    %20 = vector.broadcast %19 : f32 to vector<2x4x150xf32>
    %21 = arith.addf %18, %20 : vector<2x4x150xf32>
    %cst_7 = arith.constant 0.000000e+00 : f32
    %22 = vector.broadcast %cst_7 : f32 to vector<2x4x150xf32>
    %23 = arith.maximumf %21, %22 : vector<2x4x150xf32>
    %24 = arith.truncf %23 : vector<2x4x150xf32> to vector<2x4x150xbf16>
    %25 = vector.extract_strided_slice %24 {offsets = [0, 0, 0], sizes = [1, 4, 150], strides = [1, 1, 1]} : vector<2x4x150xbf16> to vector<1x4x150xbf16>
    %26 = vector.shape_cast %25 : vector<1x4x150xbf16> to vector<4x150xbf16>
    %c0_8 = arith.constant 0 : index
    %c0_9 = arith.constant 0 : index
    %27 = vector.load %arg13[%c0_8, %c0_9] : memref<8x512xbf16, #tpu.memory_space<vmem>>, vector<4x150xbf16>
    tpu.vector_store %arg13[%c0_8, %c0_9], %26 {strides = array<i32>} : memref<8x512xbf16, #tpu.memory_space<vmem>>, vector<4x150xbf16>,
    %28 = vector.extract_strided_slice %24 {offsets = [1, 0, 0], sizes = [1, 4, 150], strides = [1, 1, 1]} : vector<2x4x150xbf16> to vector<1x4x150xbf16>
    %29 = vector.shape_cast %28 : vector<1x4x150xbf16> to vector<4x150xbf16>
    %c0_10 = arith.constant 0 : index
    %c256 = arith.constant 256 : index
    %30 = vector.load %arg13[%c0_10, %c256] : memref<8x512xbf16, #tpu.memory_space<vmem>>, vector<4x150xbf16>
    tpu.vector_store %arg13[%c0_10, %c256], %29 {strides = array<i32>} : memref<8x512xbf16, #tpu.memory_space<vmem>>, vector<4x150xbf16>,
    %c0_11 = arith.constant 0 : index
    %c0_12 = arith.constant 0 : index
    %31 = vector.load %arg13[%c0_11, %c0_12] : memref<8x512xbf16, #tpu.memory_space<vmem>>, vector<4x512xbf16>
    %c0_13 = arith.constant 0 : index
    %c0_14 = arith.constant 0 : index
    %c0_15 = arith.constant 0 : index
    %32 = vector.load %arg4[%c0_13, %c0_14, %c0_15] : memref<3x8x4xbf16, #tpu.memory_space<vmem>>, vector<1x8x4xbf16>
    %33 = vector.shape_cast %32 : vector<1x8x4xbf16> to vector<8x4xbf16>
    %cst_16 = arith.constant dense<0.000000e+00> : vector<8x512xf32>
    %34 = tpu.matmul %33, %31, %cst_16 {dimension_numbers = #tpu.dot_dimension_numbers<[1], [0], [0], [1], [0, 0, 1, 1], [], []>} : vector<8x4xbf16>, vector<4x512xbf16>, vector<8x512xf32> -> vector<8x512xf32>
    %c1_i32 = arith.constant 1 : i32
    %35 = tpu.dynamic_rotate %34 by %c1_i32 dim 1 : vector<8x512xf32>, i32 -> vector<8x512xf32>
    %c1_17 = arith.constant 1 : index
    %c0_18 = arith.constant 0 : index
    %c0_19 = arith.constant 0 : index
    %36 = vector.load %arg4[%c1_17, %c0_18, %c0_19] : memref<3x8x4xbf16, #tpu.memory_space<vmem>>, vector<1x8x4xbf16>
    %37 = vector.shape_cast %36 : vector<1x8x4xbf16> to vector<8x4xbf16>
    %cst_20 = arith.constant dense<0.000000e+00> : vector<8x512xf32>
    %38 = tpu.matmul %37, %31, %cst_20 {dimension_numbers = #tpu.dot_dimension_numbers<[1], [0], [0], [1], [0, 0, 1, 1], [], []>} : vector<8x4xbf16>, vector<4x512xbf16>, vector<8x512xf32> -> vector<8x512xf32>
    %39 = arith.addf %35, %38 : vector<8x512xf32>
    %c2 = arith.constant 2 : index
    %c0_21 = arith.constant 0 : index
    %c0_22 = arith.constant 0 : index
    %40 = vector.load %arg4[%c2, %c0_21, %c0_22] : memref<3x8x4xbf16, #tpu.memory_space<vmem>>, vector<1x8x4xbf16>
    %41 = vector.shape_cast %40 : vector<1x8x4xbf16> to vector<8x4xbf16>
    %cst_23 = arith.constant dense<0.000000e+00> : vector<8x512xf32>
    %42 = tpu.matmul %41, %31, %cst_23 {dimension_numbers = #tpu.dot_dimension_numbers<[1], [0], [0], [1], [0, 0, 1, 1], [], []>} : vector<8x4xbf16>, vector<4x512xbf16>, vector<8x512xf32> -> vector<8x512xf32>
    %c511_i32 = arith.constant 511 : i32
    %43 = tpu.dynamic_rotate %42 by %c511_i32 dim 1 : vector<8x512xf32>, i32 -> vector<8x512xf32>
    %44 = arith.addf %39, %43 : vector<8x512xf32>
    %c0_24 = arith.constant 0 : index
    %c0_25 = arith.constant 0 : index
    %45 = vector.load %arg5[%c0_24, %c0_25] : memref<8x1xf32, #tpu.memory_space<vmem>>, vector<8x1xf32>
    %c0_26 = arith.constant 0 : index
    %c0_27 = arith.constant 0 : index
    %46 = vector.load %arg6[%c0_26, %c0_27] : memref<8x256xf32, #tpu.memory_space<vmem>>, vector<8x256xf32>
    %c0_28 = arith.constant 0 : index
    %c0_29 = arith.constant 0 : index
    %47 = vector.load %arg7[%c0_28, %c0_29] : memref<8x256xf32, #tpu.memory_space<vmem>>, vector<8x256xf32>
    %48 = vector.extract_strided_slice %44 {offsets = [0, 0], sizes = [8, 256], strides = [1, 1]} : vector<8x512xf32> to vector<8x256xf32>
    %49 = vector.broadcast %45 : vector<8x1xf32> to vector<8x256xf32>
    %50 = arith.addf %48, %49 : vector<8x256xf32>
    %51 = vector.broadcast %4 : vector<1x256xf32> to vector<8x256xf32>
    %52 = arith.mulf %50, %51 : vector<8x256xf32>
    %53 = vector.shape_cast %52 : vector<8x256xf32> to vector<1x8x256xf32>
    %cst_30 = arith.constant dense<0.000000e+00> : vector<1xf32>
    %54 = vector.multi_reduction <add>, %53, %cst_30 [1, 2] : vector<1x8x256xf32> to vector<1xf32>
    %55 = vector.shape_cast %54 : vector<1xf32> to vector<1x1x1xf32>
    %56 = vector.extract %55[0, 0, 0] : f32 from vector<1x1x1xf32>
    %57 = vector.broadcast %56 : f32 to vector<1x1xf32>
    %cst_31 = arith.constant 8.33333353E-4 : f32
    %58 = vector.broadcast %cst_31 : f32 to vector<1x1xf32>
    %59 = arith.mulf %57, %58 : vector<1x1xf32>
    %60 = vector.broadcast %59 : vector<1x1xf32> to vector<8x256xf32>
    %61 = arith.subf %52, %60 : vector<8x256xf32>
    %62 = vector.broadcast %4 : vector<1x256xf32> to vector<8x256xf32>
    %63 = arith.mulf %61, %62 : vector<8x256xf32>
    %64 = arith.mulf %63, %63 : vector<8x256xf32>
    %65 = vector.shape_cast %64 : vector<8x256xf32> to vector<1x8x256xf32>
    %cst_32 = arith.constant dense<0.000000e+00> : vector<1xf32>
    %66 = vector.multi_reduction <add>, %65, %cst_32 [1, 2] : vector<1x8x256xf32> to vector<1xf32>
    %67 = vector.shape_cast %66 : vector<1xf32> to vector<1x1x1xf32>
    %68 = vector.extract %67[0, 0, 0] : f32 from vector<1x1x1xf32>
    %69 = vector.broadcast %68 : f32 to vector<1x1xf32>
    %cst_33 = arith.constant 8.33333353E-4 : f32
    %70 = vector.broadcast %cst_33 : f32 to vector<1x1xf32>
    %71 = arith.mulf %69, %70 : vector<1x1xf32>
    %cst_34 = arith.constant 9.99999974E-6 : f32
    %72 = vector.broadcast %cst_34 : f32 to vector<1x1xf32>
    %73 = arith.addf %71, %72 : vector<1x1xf32>
    %74 = math.rsqrt %73 : vector<1x1xf32>
    %75 = vector.broadcast %74 : vector<1x1xf32> to vector<8x256xf32>
    %76 = arith.mulf %63, %75 : vector<8x256xf32>
    %77 = arith.mulf %76, %46 : vector<8x256xf32>
    %78 = arith.addf %77, %47 : vector<8x256xf32>
    %cst_35 = arith.constant 0.000000e+00 : f32
    %79 = vector.broadcast %cst_35 : f32 to vector<8x256xf32>
    %80 = arith.maximumf %78, %79 : vector<8x256xf32>
    %81 = arith.truncf %80 : vector<8x256xf32> to vector<8x256xbf16>
    %c0_36 = arith.constant 0 : index
    %c0_37 = arith.constant 0 : index
    %82 = vector.load %arg13[%c0_36, %c0_37] : memref<8x512xbf16, #tpu.memory_space<vmem>>, vector<8x256xbf16>
    tpu.vector_store %arg13[%c0_36, %c0_37], %81 {strides = array<i32>} : memref<8x512xbf16, #tpu.memory_space<vmem>>, vector<8x256xbf16>,
    %83 = vector.extract_strided_slice %44 {offsets = [0, 256], sizes = [8, 256], strides = [1, 1]} : vector<8x512xf32> to vector<8x256xf32>
    %84 = vector.broadcast %45 : vector<8x1xf32> to vector<8x256xf32>
    %85 = arith.addf %83, %84 : vector<8x256xf32>
    %86 = vector.broadcast %4 : vector<1x256xf32> to vector<8x256xf32>
    %87 = arith.mulf %85, %86 : vector<8x256xf32>
    %88 = vector.shape_cast %87 : vector<8x256xf32> to vector<1x8x256xf32>
    %cst_38 = arith.constant dense<0.000000e+00> : vector<1xf32>
    %89 = vector.multi_reduction <add>, %88, %cst_38 [1, 2] : vector<1x8x256xf32> to vector<1xf32>
    %90 = vector.shape_cast %89 : vector<1xf32> to vector<1x1x1xf32>
    %91 = vector.extract %90[0, 0, 0] : f32 from vector<1x1x1xf32>
    %92 = vector.broadcast %91 : f32 to vector<1x1xf32>
    %cst_39 = arith.constant 8.33333353E-4 : f32
    %93 = vector.broadcast %cst_39 : f32 to vector<1x1xf32>
    %94 = arith.mulf %92, %93 : vector<1x1xf32>
    %95 = vector.broadcast %94 : vector<1x1xf32> to vector<8x256xf32>
    %96 = arith.subf %87, %95 : vector<8x256xf32>
    %97 = vector.broadcast %4 : vector<1x256xf32> to vector<8x256xf32>
    %98 = arith.mulf %96, %97 : vector<8x256xf32>
    %99 = arith.mulf %98, %98 : vector<8x256xf32>
    %100 = vector.shape_cast %99 : vector<8x256xf32> to vector<1x8x256xf32>
    %cst_40 = arith.constant dense<0.000000e+00> : vector<1xf32>
    %101 = vector.multi_reduction <add>, %100, %cst_40 [1, 2] : vector<1x8x256xf32> to vector<1xf32>
    %102 = vector.shape_cast %101 : vector<1xf32> to vector<1x1x1xf32>
    %103 = vector.extract %102[0, 0, 0] : f32 from vector<1x1x1xf32>
    %104 = vector.broadcast %103 : f32 to vector<1x1xf32>
    %cst_41 = arith.constant 8.33333353E-4 : f32
    %105 = vector.broadcast %cst_41 : f32 to vector<1x1xf32>
    %106 = arith.mulf %104, %105 : vector<1x1xf32>
    %cst_42 = arith.constant 9.99999974E-6 : f32
    %107 = vector.broadcast %cst_42 : f32 to vector<1x1xf32>
    %108 = arith.addf %106, %107 : vector<1x1xf32>
    %109 = math.rsqrt %108 : vector<1x1xf32>
    %110 = vector.broadcast %109 : vector<1x1xf32> to vector<8x256xf32>
    %111 = arith.mulf %98, %110 : vector<8x256xf32>
    %112 = arith.mulf %111, %46 : vector<8x256xf32>
    %113 = arith.addf %112, %47 : vector<8x256xf32>
    %cst_43 = arith.constant 0.000000e+00 : f32
    %114 = vector.broadcast %cst_43 : f32 to vector<8x256xf32>
    %115 = arith.maximumf %113, %114 : vector<8x256xf32>
    %116 = arith.truncf %115 : vector<8x256xf32> to vector<8x256xbf16>
    %c0_44 = arith.constant 0 : index
    %c256_45 = arith.constant 256 : index
    %117 = vector.load %arg13[%c0_44, %c256_45] : memref<8x512xbf16, #tpu.memory_space<vmem>>, vector<8x256xbf16>
    tpu.vector_store %arg13[%c0_44, %c256_45], %116 {strides = array<i32>} : memref<8x512xbf16, #tpu.memory_space<vmem>>, vector<8x256xbf16>,
    %c0_46 = arith.constant 0 : index
    %c0_47 = arith.constant 0 : index
    %118 = vector.load %arg13[%c0_46, %c0_47] : memref<8x512xbf16, #tpu.memory_space<vmem>>, vector<8x512xbf16>
    %c0_48 = arith.constant 0 : index
    %c0_49 = arith.constant 0 : index
    %c0_50 = arith.constant 0 : index
    %119 = vector.load %arg8[%c0_48, %c0_49, %c0_50] : memref<3x8x8xbf16, #tpu.memory_space<vmem>>, vector<1x8x8xbf16>
    %120 = vector.shape_cast %119 : vector<1x8x8xbf16> to vector<8x8xbf16>
    %cst_51 = arith.constant dense<0.000000e+00> : vector<8x512xf32>
    %121 = tpu.matmul %120, %118, %cst_51 {dimension_numbers = #tpu.dot_dimension_numbers<[1], [0], [0], [1], [0, 0, 1, 1], [], []>} : vector<8x8xbf16>, vector<8x512xbf16>, vector<8x512xf32> -> vector<8x512xf32>
    %c1_i32_52 = arith.constant 1 : i32
    %122 = tpu.dynamic_rotate %121 by %c1_i32_52 dim 1 : vector<8x512xf32>, i32 -> vector<8x512xf32>
    %c1_53 = arith.constant 1 : index
    %c0_54 = arith.constant 0 : index
    %c0_55 = arith.constant 0 : index
    %123 = vector.load %arg8[%c1_53, %c0_54, %c0_55] : memref<3x8x8xbf16, #tpu.memory_space<vmem>>, vector<1x8x8xbf16>
    %124 = vector.shape_cast %123 : vector<1x8x8xbf16> to vector<8x8xbf16>
    %cst_56 = arith.constant dense<0.000000e+00> : vector<8x512xf32>
    %125 = tpu.matmul %124, %118, %cst_56 {dimension_numbers = #tpu.dot_dimension_numbers<[1], [0], [0], [1], [0, 0, 1, 1], [], []>} : vector<8x8xbf16>, vector<8x512xbf16>, vector<8x512xf32> -> vector<8x512xf32>
    %126 = arith.addf %122, %125 : vector<8x512xf32>
    %c2_57 = arith.constant 2 : index
    %c0_58 = arith.constant 0 : index
    %c0_59 = arith.constant 0 : index
    %127 = vector.load %arg8[%c2_57, %c0_58, %c0_59] : memref<3x8x8xbf16, #tpu.memory_space<vmem>>, vector<1x8x8xbf16>
    %128 = vector.shape_cast %127 : vector<1x8x8xbf16> to vector<8x8xbf16>
    %cst_60 = arith.constant dense<0.000000e+00> : vector<8x512xf32>
    %129 = tpu.matmul %128, %118, %cst_60 {dimension_numbers = #tpu.dot_dimension_numbers<[1], [0], [0], [1], [0, 0, 1, 1], [], []>} : vector<8x8xbf16>, vector<8x512xbf16>, vector<8x512xf32> -> vector<8x512xf32>
    %c511_i32_61 = arith.constant 511 : i32
    %130 = tpu.dynamic_rotate %129 by %c511_i32_61 dim 1 : vector<8x512xf32>, i32 -> vector<8x512xf32>
    %131 = arith.addf %126, %130 : vector<8x512xf32>
    %c0_62 = arith.constant 0 : index
    %c0_63 = arith.constant 0 : index
    %132 = vector.load %arg9[%c0_62, %c0_63] : memref<8x1xf32, #tpu.memory_space<vmem>>, vector<8x1xf32>
    %c0_64 = arith.constant 0 : index
    %c0_65 = arith.constant 0 : index
    %133 = vector.load %arg10[%c0_64, %c0_65] : memref<8x256xf32, #tpu.memory_space<vmem>>, vector<8x256xf32>
    %c0_66 = arith.constant 0 : index
    %c0_67 = arith.constant 0 : index
    %134 = vector.load %arg11[%c0_66, %c0_67] : memref<8x256xf32, #tpu.memory_space<vmem>>, vector<8x256xf32>
    %135 = vector.extract_strided_slice %131 {offsets = [0, 0], sizes = [8, 256], strides = [1, 1]} : vector<8x512xf32> to vector<8x256xf32>
    %136 = vector.broadcast %132 : vector<8x1xf32> to vector<8x256xf32>
    %137 = arith.addf %135, %136 : vector<8x256xf32>
    %138 = vector.broadcast %4 : vector<1x256xf32> to vector<8x256xf32>
    %139 = arith.mulf %137, %138 : vector<8x256xf32>
    %140 = vector.shape_cast %139 : vector<8x256xf32> to vector<1x8x256xf32>
    %cst_68 = arith.constant dense<0.000000e+00> : vector<1xf32>
    %141 = vector.multi_reduction <add>, %140, %cst_68 [1, 2] : vector<1x8x256xf32> to vector<1xf32>
    %142 = vector.shape_cast %141 : vector<1xf32> to vector<1x1x1xf32>
    %143 = vector.extract %142[0, 0, 0] : f32 from vector<1x1x1xf32>
    %144 = vector.broadcast %143 : f32 to vector<1x1xf32>
    %cst_69 = arith.constant 8.33333353E-4 : f32
    %145 = vector.broadcast %cst_69 : f32 to vector<1x1xf32>
    %146 = arith.mulf %144, %145 : vector<1x1xf32>
    %147 = vector.broadcast %146 : vector<1x1xf32> to vector<8x256xf32>
    %148 = arith.subf %139, %147 : vector<8x256xf32>
    %149 = vector.broadcast %4 : vector<1x256xf32> to vector<8x256xf32>
    %150 = arith.mulf %148, %149 : vector<8x256xf32>
    %151 = arith.mulf %150, %150 : vector<8x256xf32>
    %152 = vector.shape_cast %151 : vector<8x256xf32> to vector<1x8x256xf32>
    %cst_70 = arith.constant dense<0.000000e+00> : vector<1xf32>
    %153 = vector.multi_reduction <add>, %152, %cst_70 [1, 2] : vector<1x8x256xf32> to vector<1xf32>
    %154 = vector.shape_cast %153 : vector<1xf32> to vector<1x1x1xf32>
    %155 = vector.extract %154[0, 0, 0] : f32 from vector<1x1x1xf32>
    %156 = vector.broadcast %155 : f32 to vector<1x1xf32>
    %cst_71 = arith.constant 8.33333353E-4 : f32
    %157 = vector.broadcast %cst_71 : f32 to vector<1x1xf32>
    %158 = arith.mulf %156, %157 : vector<1x1xf32>
    %cst_72 = arith.constant 9.99999974E-6 : f32
    %159 = vector.broadcast %cst_72 : f32 to vector<1x1xf32>
    %160 = arith.addf %158, %159 : vector<1x1xf32>
    %161 = math.rsqrt %160 : vector<1x1xf32>
    %162 = vector.broadcast %161 : vector<1x1xf32> to vector<8x256xf32>
    %163 = arith.mulf %150, %162 : vector<8x256xf32>
    %164 = arith.mulf %163, %133 : vector<8x256xf32>
    %165 = arith.addf %164, %134 : vector<8x256xf32>
    %cst_73 = arith.constant 0.000000e+00 : f32
    %166 = vector.broadcast %cst_73 : f32 to vector<8x256xf32>
    %167 = arith.maximumf %165, %166 : vector<8x256xf32>
    %c0_74 = arith.constant 0 : index
    %c0_75 = arith.constant 0 : index
    %c0_76 = arith.constant 0 : index
    %168 = vector.load %arg12[%c0_74, %c0_75, %c0_76] : memref<2x8x256xf32, #tpu.memory_space<vmem>>, vector<1x8x256xf32>
    %169 = vector.shape_cast %168 : vector<1x8x256xf32> to vector<8x256xf32>
    %170 = vector.shape_cast %167 : vector<8x256xf32> to vector<1x8x256xf32>
    tpu.vector_store %arg12[%c0_74, %c0_75, %c0_76], %170 {strides = array<i32>} : memref<2x8x256xf32, #tpu.memory_space<vmem>>, vector<1x8x256xf32>,
    %171 = vector.extract_strided_slice %131 {offsets = [0, 256], sizes = [8, 256], strides = [1, 1]} : vector<8x512xf32> to vector<8x256xf32>
    %172 = vector.broadcast %132 : vector<8x1xf32> to vector<8x256xf32>
    %173 = arith.addf %171, %172 : vector<8x256xf32>
    %174 = vector.broadcast %4 : vector<1x256xf32> to vector<8x256xf32>
    %175 = arith.mulf %173, %174 : vector<8x256xf32>
    %176 = vector.shape_cast %175 : vector<8x256xf32> to vector<1x8x256xf32>
    %cst_77 = arith.constant dense<0.000000e+00> : vector<1xf32>
    %177 = vector.multi_reduction <add>, %176, %cst_77 [1, 2] : vector<1x8x256xf32> to vector<1xf32>
    %178 = vector.shape_cast %177 : vector<1xf32> to vector<1x1x1xf32>
    %179 = vector.extract %178[0, 0, 0] : f32 from vector<1x1x1xf32>
    %180 = vector.broadcast %179 : f32 to vector<1x1xf32>
    %cst_78 = arith.constant 8.33333353E-4 : f32
    %181 = vector.broadcast %cst_78 : f32 to vector<1x1xf32>
    %182 = arith.mulf %180, %181 : vector<1x1xf32>
    %183 = vector.broadcast %182 : vector<1x1xf32> to vector<8x256xf32>
    %184 = arith.subf %175, %183 : vector<8x256xf32>
    %185 = vector.broadcast %4 : vector<1x256xf32> to vector<8x256xf32>
    %186 = arith.mulf %184, %185 : vector<8x256xf32>
    %187 = arith.mulf %186, %186 : vector<8x256xf32>
    %188 = vector.shape_cast %187 : vector<8x256xf32> to vector<1x8x256xf32>
    %cst_79 = arith.constant dense<0.000000e+00> : vector<1xf32>
    %189 = vector.multi_reduction <add>, %188, %cst_79 [1, 2] : vector<1x8x256xf32> to vector<1xf32>
    %190 = vector.shape_cast %189 : vector<1xf32> to vector<1x1x1xf32>
    %191 = vector.extract %190[0, 0, 0] : f32 from vector<1x1x1xf32>
    %192 = vector.broadcast %191 : f32 to vector<1x1xf32>
    %cst_80 = arith.constant 8.33333353E-4 : f32
    %193 = vector.broadcast %cst_80 : f32 to vector<1x1xf32>
    %194 = arith.mulf %192, %193 : vector<1x1xf32>
    %cst_81 = arith.constant 9.99999974E-6 : f32
    %195 = vector.broadcast %cst_81 : f32 to vector<1x1xf32>
    %196 = arith.addf %194, %195 : vector<1x1xf32>
    %197 = math.rsqrt %196 : vector<1x1xf32>
    %198 = vector.broadcast %197 : vector<1x1xf32> to vector<8x256xf32>
    %199 = arith.mulf %186, %198 : vector<8x256xf32>
    %200 = arith.mulf %199, %133 : vector<8x256xf32>
    %201 = arith.addf %200, %134 : vector<8x256xf32>
    %cst_82 = arith.constant 0.000000e+00 : f32
    %202 = vector.broadcast %cst_82 : f32 to vector<8x256xf32>
    %203 = arith.maximumf %201, %202 : vector<8x256xf32>
    %c1_83 = arith.constant 1 : index
    %c0_84 = arith.constant 0 : index
    %c0_85 = arith.constant 0 : index
    %204 = vector.load %arg12[%c1_83, %c0_84, %c0_85] : memref<2x8x256xf32, #tpu.memory_space<vmem>>, vector<1x8x256xf32>
    %205 = vector.shape_cast %204 : vector<1x8x256xf32> to vector<8x256xf32>
    %206 = vector.shape_cast %203 : vector<8x256xf32> to vector<1x8x256xf32>
    tpu.vector_store %arg12[%c1_83, %c0_84, %c0_85], %206 {strides = array<i32>} : memref<2x8x256xf32, #tpu.memory_space<vmem>>, vector<1x8x256xf32>,
    return
  }
  func.func @transform_0(%arg0: i32) -> (i32, i32, i32, i32) {
    %c0_i32 = arith.constant 0 : i32
    %c0_i32_0 = arith.constant 0 : i32
    %c0_i32_1 = arith.constant 0 : i32
    %c0_i32_2 = arith.constant 0 : i32
    return %arg0, %c0_i32, %c0_i32_0, %c0_i32_1 : i32, i32, i32, i32
  }
  func.func @transform_1(%arg0: i32) -> i32 {
    %c0_i32 = arith.constant 0 : i32
    %c0_i32_0 = arith.constant 0 : i32
    return %c0_i32 : i32
  }
  func.func @transform_2(%arg0: i32) -> i32 {
    %c0_i32 = arith.constant 0 : i32
    %c0_i32_0 = arith.constant 0 : i32
    return %c0_i32 : i32
  }
  func.func @transform_3(%arg0: i32) -> (i32, i32, i32) {
    %c0_i32 = arith.constant 0 : i32
    %c0_i32_0 = arith.constant 0 : i32
    %c0_i32_1 = arith.constant 0 : i32
    %c0_i32_2 = arith.constant 0 : i32
    return %c0_i32, %c0_i32_0, %c0_i32_1 : i32, i32, i32
  }
  func.func @transform_4(%arg0: i32) -> (i32, i32) {
    %c0_i32 = arith.constant 0 : i32
    %c0_i32_0 = arith.constant 0 : i32
    %c0_i32_1 = arith.constant 0 : i32
    return %c0_i32, %c0_i32_0 : i32, i32
  }
  func.func @transform_5(%arg0: i32) -> (i32, i32) {
    %c0_i32 = arith.constant 0 : i32
    %c0_i32_0 = arith.constant 0 : i32
    %c0_i32_1 = arith.constant 0 : i32
    return %c0_i32, %c0_i32_0 : i32, i32
  }
  func.func @transform_6(%arg0: i32) -> (i32, i32) {
    %c0_i32 = arith.constant 0 : i32
    %c0_i32_0 = arith.constant 0 : i32
    %c0_i32_1 = arith.constant 0 : i32
    return %c0_i32, %c0_i32_0 : i32, i32
  }
  func.func @transform_7(%arg0: i32) -> (i32, i32, i32) {
    %c0_i32 = arith.constant 0 : i32
    %c0_i32_0 = arith.constant 0 : i32
    %c0_i32_1 = arith.constant 0 : i32
    %c0_i32_2 = arith.constant 0 : i32
    return %c0_i32, %c0_i32_0, %c0_i32_1 : i32, i32, i32
  }
  func.func @transform_8(%arg0: i32) -> (i32, i32) {
    %c0_i32 = arith.constant 0 : i32
    %c0_i32_0 = arith.constant 0 : i32
    %c0_i32_1 = arith.constant 0 : i32
    return %c0_i32, %c0_i32_0 : i32, i32
  }
  func.func @transform_9(%arg0: i32) -> (i32, i32) {
    %c0_i32 = arith.constant 0 : i32
    %c0_i32_0 = arith.constant 0 : i32
    %c0_i32_1 = arith.constant 0 : i32
    return %c0_i32, %c0_i32_0 : i32, i32
  }
  func.func @transform_10(%arg0: i32) -> (i32, i32) {
    %c0_i32 = arith.constant 0 : i32
    %c0_i32_0 = arith.constant 0 : i32
    %c0_i32_1 = arith.constant 0 : i32
    return %c0_i32, %c0_i32_0 : i32, i32
  }
  func.func @transform_11(%arg0: i32) -> (i32, i32, i32) {
    %c0_i32 = arith.constant 0 : i32
    %c0_i32_0 = arith.constant 0 : i32
    %c0_i32_1 = arith.constant 0 : i32
    return %arg0, %c0_i32, %c0_i32_0 : i32, i32, i32
  }
}

</mosaic_0001>

<bundles_post_ra>
// kernel: landmark_conv_forward.1
= control target key start
LH: loop header
LB: loop body
LE: loop exit
PB: predicated region body
PF: predicated region fallthrough
CT: control target
= control target key end

     0   :  { %17 = vsyncpa [#allocation6], 0  ;;  %s1672_s0 = inlined_call_operand.vmem [shape: f32[2,4,2,150], index: 0, kind: input, shape index: {}]   ;;  %s1673_s1 = inlined_call_operand.vmem [shape: f32[2], index: 1, kind: input, shape index: {}]   ;;  %s1674_s2 = inlined_call_operand.<no memory space> [shape: f32[1], index: 2, kind: input, shape index: {}]   ;;  %s1675_s3 = inlined_call_operand.vmem [shape: bf16[3,8,4], index: 3, kind: input, shape index: {}]   ;;  %s1676_s4 = inlined_call_operand.vmem [shape: f32[8,1], index: 4, kind: input, shape index: {}]   ;;  %s1677_s5 = inlined_call_operand.vmem [shape: f32[8,256], index: 5, kind: input, shape index: {}]   ;;  %s1678_s6 = inlined_call_operand.vmem [shape: f32[8,256], index: 6, kind: input, shape index: {}]   ;;  %s1679_s7 = inlined_call_operand.vmem [shape: bf16[3,8,8], index: 7, kind: input, shape index: {}]   ;;  %s1680_s8 = inlined_call_operand.vmem [shape: f32[8,1], index: 8, kind: input, shape index: {}]   ;;  %s1681_s9 = inlined_call_operand.vmem [shape: f32[8,256], index: 9, kind: input, shape index: {}]   ;;  %s1682_s10 = inlined_call_operand.vmem [shape: f32[8,256], index: 10, kind: input, shape index: {}]   ;;  %s1683_s11 = inlined_call_operand.hbm [shape: f32[2,8,256], index: 11, kind: output, shape index: {}]  }
   0x1   :  { %18 = vsyncpa [#allocation5], 0  ;;  %s27_s19 = sshll.u32 %s1673_s1, 4  ;;  %s28_s19 = int_to_ptr.vmem [resolvable:$true] %s27_s19 }
   0x2   :  { %s1326_s20 = scalar_lea.vmem %s28_s19, 16  ;;  %p1331_p1 = scmp.lt.s32.totalorder %s28_s19, %s28_s19 }
   0x3   :  { %p1327_p0 = scmp.ne.s32.totalorder %s28_s19, %s1326_s20  ;;  %p1332_p2 = scmp.lt.s32.totalorder %s1326_s20, %s1326_s20 }
   0x5   :  { %p1333_p3 = por %p1332_p2, %p1331_p1 }
   0x7   :  { %p1334_p4 = pnand %p1333_p3, %p1327_p0 }
   0x9   :  { %1337 = shalt.err (!%p1334_p4)
}
   0xa   :  { %s1364_s21 = smov [#allocation4]  }
   0xb   :  { %30 = dma.vmem_to_smem %s28_s19, 16, %s1364_s21, [#allocation6]  }
   0xc   :  { %1360 = dma.done.wait [#allocation6], 16  }
   0xd   :  { %1361 = vsyncadd [#allocation6], 4294967280 }
   0xe   :  { %52 = sfence }
   0xf   :  { %v54_v0 = vlaneseq  ;;  %v1365_v1 = vmov 0   ;;  %s73_s22 = sld [smem:[#allocation4]]  ;;  %s1221_s1 = sld [smem:[#allocation4 + $0x1]]  ;;  %v65_v3 = vld [vmem:[%s1672_s0] sm:$0xf]  ;;  %v134_v9 = vstv %s1674_s2  ;;  %vm284_vm0 = vcmask 1041409  }
  0x10   :  { %63 = vst [vmem:[#allocation2] sm:$0x33] %v1365_v1  ;;  %64 = vst [vmem:[#allocation2 + $0x8] sm:$0x33] %v1365_v1  ;;  %408 = vmatprep.mubr.bf16.mxu0 %v1365_v1  ;;  %449 = vmatprep.mubr.bf16.mxu1 %v1365_v1  ;;  %v66_v4 = vld [vmem:[%s1672_s0 + $0x4] sm:$0xf] }
  0x11   :  { %1310 = vset.pattern.permute.xlu0 %v1365_v1  ;;  %v160_v2 = vshrl.u32 %v54_v0, 7  ;;  %v666_v5 = vld [vmem:[%s1676_s4] sm:$0xff]  ;;  %v67_v6 = vld [vmem:[%s1672_s0 + $0x8] sm:$0xf]  ;;  %v68_v7 = vld [vmem:[%s1672_s0 + $0xc] sm:$0xf] }
  0x12   :  { %673 = vperm.xlu0 %1310, %v666_v5   ;;  %v69_v16 = vld [vmem:[%s1672_s0 + $0x10] sm:$0xf]  ;;  %v70_v17 = vld [vmem:[%s1672_s0 + $0x14] sm:$0xf]  ;;  %v71_v18 = vld [vmem:[%s1672_s0 + $0x18] sm:$0xf] }
  0x13   :  { %v1459_v10 = vsub.s32 0, %v160_v2  ;;  %v1461_v11 = vsub.s32 2, %v160_v2  ;;  %v72_v27 = vld [vmem:[%s1672_s0 + $0x1c] sm:$0xf]  ;;  %vm287_vm1 = vcmask 1042434   ;;  %vm290_vm2 = vcmask 1043459  }
  0x14   :  { %vm300_vm3 = vcmask 1041408   ;;  %vm301_vm4 = vcmask 177156   ;;  %vm360_vm6 = vcmask 31744   ;;  %s1366_s26 = smov 1   ;;  %vm799_vm10 = vcmask 1043456  }
  0x15   :  { %v74_v8 = vstv %s73_s22  ;;  %v84_v19 = vstv %s1221_s1  ;;  %vm1499_vm5 = vmor %vm301_vm4, %vm300_vm3  ;;  %vm795_vm11 = vcmask 64512  }
  0x16   :  { %v75_v12 = vmul.f32 %v74_v8, %v65_v3  ;;  %v76_v13 = vmul.f32 %v74_v8, %v66_v4  ;;  %v77_v14 = vmul.f32 %v74_v8, %v67_v6  ;;  %v78_v15 = vmul.f32 %v74_v8, %v68_v7 }
  0x17   :  { %v79_v20 = vmul.f32 %v74_v8, %v69_v16  ;;  %v80_v21 = vmul.f32 %v74_v8, %v70_v17  ;;  %v81_v22 = vmul.f32 %v74_v8, %v71_v18  ;;  %v85_v23 = vmul.f32 %v84_v19, %v65_v3 }
  0x18   :  { %v86_v24 = vmul.f32 %v84_v19, %v66_v4  ;;  %v87_v25 = vmul.f32 %v84_v19, %v67_v6  ;;  %v88_v26 = vmul.f32 %v84_v19, %v68_v7  ;;  %v82_v28 = vmul.f32 %v74_v8, %v72_v27 }
  0x19   :  { %v89_v29 = vmul.f32 %v84_v19, %v69_v16  ;;  %v90_v30 = vmul.f32 %v84_v19, %v70_v17  ;;  %v91_v31 = vmul.f32 %v84_v19, %v71_v18  ;;  %v1222_v32 = vrot.slane %v85_v23, 9 }
  0x1a   :  { %v1223_v33 = vrot.slane %v86_v24, 9  ;;  %v1224_v34 = vrot.slane %v87_v25, 9  ;;  %v1225_v35 = vrot.slane %v88_v26, 9  ;;  %v92_v36 = vmul.f32 %v84_v19, %v72_v27 }
  0x1b   :  { %v1226_v37 = vrot.slane %v89_v29, 9  ;;  %v1227_v38 = vrot.slane %v90_v30, 9  ;;  %v1228_v39 = vrot.slane %v91_v31, 9  ;;  %v125_v40 = vadd.f32 %v1222_v32, %v75_v12 }
  0x1c   :  { %v126_v41 = vadd.f32 %v1223_v33, %v76_v13  ;;  %v127_v42 = vadd.f32 %v1224_v34, %v77_v14  ;;  %v128_v43 = vadd.f32 %v1225_v35, %v78_v15  ;;  %v1229_v44 = vrot.slane %v92_v36, 9 }
  0x1d   :  { %v129_v45 = vadd.f32 %v1226_v37, %v79_v20  ;;  %v130_v46 = vadd.f32 %v1227_v38, %v80_v21  ;;  %v131_v47 = vadd.f32 %v1228_v39, %v81_v22  ;;  %v135_v48 = vadd.f32 %v134_v9, %v125_v40 }
  0x1e   :  { %v136_v49 = vadd.f32 %v134_v9, %v126_v41  ;;  %v137_v50 = vadd.f32 %v134_v9, %v127_v42  ;;  %v138_v51 = vadd.f32 %v134_v9, %v128_v43  ;;  %v132_v52 = vadd.f32 %v1229_v44, %v82_v28 }
  0x1f   :  { %v139_v53 = vadd.f32 %v134_v9, %v129_v45  ;;  %v140_v54 = vadd.f32 %v134_v9, %v130_v46  ;;  %v141_v55 = vadd.f32 %v134_v9, %v131_v47  ;;  %v143_v56 = vmax.f32 %v135_v48, 0.0 }
  0x20   :  { %v144_v57 = vmax.f32 %v136_v49, 0.0  ;;  %v145_v58 = vmax.f32 %v137_v50, 0.0  ;;  %v146_v59 = vmax.f32 %v138_v51, 0.0  ;;  %v142_v60 = vadd.f32 %v134_v9, %v132_v52 }
  0x21   :  { %v147_v61 = vmax.f32 %v139_v53, 0.0  ;;  %v148_v62 = vmax.f32 %v140_v54, 0.0  ;;  %v149_v63 = vmax.f32 %v141_v55, 0.0  ;;  %v162_v2 = vrot.slane %v143_v56, %v1459_v10 }
  0x22   :  { %v166_v3 = vrot.slane %v143_v56, %v1461_v11  ;;  %v170_v4 = vrot.slane %v144_v57, %v1459_v10  ;;  %v174_v5 = vrot.slane %v144_v57, %v1461_v11  ;;  %v178_v6 = vrot.slane %v145_v58, %v1459_v10 }
  0x23   :  { %v182_v7 = vrot.slane %v145_v58, %v1461_v11  ;;  %v186_v8 = vrot.slane %v146_v59, %v1459_v10  ;;  %v190_v12 = vrot.slane %v146_v59, %v1461_v11  ;;  %v150_v14 = vmax.f32 %v142_v60, 0.0 }
  0x24   :  { %v1276_v9 = vpack.c.bf16 %v166_v3, %v162_v2  ;;  %v1277_v13 = vpack.c.bf16 %v174_v5, %v170_v4  ;;  %v194_v15 = vrot.slane %v147_v61, %v1459_v10  ;;  %v198_v18 = vrot.slane %v147_v61, %v1461_v11 }
  0x25   :  { %v1278_v16 = vpack.c.bf16 %v182_v7, %v178_v6  ;;  %v1279_v17 = vpack.c.bf16 %v190_v12, %v186_v8  ;;  %v202_v19 = vrot.slane %v148_v62, %v1459_v10  ;;  %v206_v30 = vrot.slane %v148_v62, %v1461_v11 }
  0x26   :  { %v275_v20 = vunpack.c.l.b16 %v1276_v9  ;;  %v276_v21 = vunpack.c.h.b16 %v1276_v9  ;;  %v277_v22 = vunpack.c.l.b16 %v1277_v13  ;;  %v278_v23 = vunpack.c.h.b16 %v1277_v13 }
  0x27   :  { %v279_v24 = vunpack.c.l.b16 %v1278_v16  ;;  %v280_v25 = vunpack.c.h.b16 %v1278_v16  ;;  %v281_v26 = vunpack.c.l.b16 %v1279_v17  ;;  %v282_v27 = vunpack.c.h.b16 %v1279_v17 }
  0x28   :  { %v283_v28 = vrot.slane %v277_v22, 7  ;;  %v292_v29 = vrot.slane %v278_v23, 7  ;;  %v210_v31 = vrot.slane %v149_v63, %v1459_v10  ;;  %v214_v38 = vrot.slane %v149_v63, %v1461_v11 }
  0x29   :  { %v286_v32 = vrot.slane %v279_v24, 6  ;;  %v289_v33 = vrot.slane %v281_v26, 5  ;;  %v294_v34 = vrot.slane %v280_v25, 6  ;;  %v296_v35 = vrot.slane %v282_v27, 5 }
  0x2a   :  { %v285_v36 = vsel %vm284_vm0, %v283_v28, %v275_v20  ;;  %v293_v37 = vsel %vm284_vm0, %v292_v29, %v276_v21  ;;  %v218_v39 = vrot.slane %v150_v14, %v1459_v10  ;;  %v222_v42 = vrot.slane %v150_v14, %v1461_v11  ;;  %v349_v14 = vld [vmem:[%s1675_s3] sm:$0xf]  ;;  %v1251_v20 = vld [vmem:[%s1675_s3 + $0x8] sm:$0xf] }
  0x2b   :  { %v288_v40 = vsel %vm287_vm1, %v286_v32, %v285_v36  ;;  %v295_v41 = vsel %vm287_vm1, %v294_v34, %v293_v37  ;;  %v1280_v43 = vpack.c.bf16 %v198_v18, %v194_v15  ;;  %v1281_v47 = vpack.c.bf16 %v206_v30, %v202_v19  ;;  %v1246_v19 = vld [vmem:[%s1675_s3 + $0x4] sm:$0xf]  ;;  %s1367_s3 = smov 127  }
  0x2c   :  { %v291_v44 = vsel %vm290_vm2, %v289_v33, %v288_v40  ;;  %v297_v45 = vsel %vm290_vm2, %v296_v35, %v295_v41  ;;  %v1282_v48 = vpack.c.bf16 %v214_v38, %v210_v31  ;;  %v1283_v49 = vpack.c.bf16 %v222_v42, %v218_v39 }
  0x2d   :  { %v298_v10 = vpack.c.b16 %v297_v45, %v291_v44  ;;  %v324_v50 = vunpack.c.l.b16 %v1280_v43  ;;  %v325_v51 = vunpack.c.h.b16 %v1280_v43  ;;  %v326_v52 = vunpack.c.l.b16 %v1281_v47 }
  0x2e   :  { %v327_v53 = vunpack.c.h.b16 %v1281_v47  ;;  %v328_v11 = vunpack.c.l.b16 %v1282_v48  ;;  %v329_v54 = vunpack.c.h.b16 %v1282_v48  ;;  %v330_v55 = vunpack.c.l.b16 %v1283_v49 }
  0x2f   :  { %303 = vst.msk [vmem:[#allocation2] sm:$0x33] %vm1499_vm5, %v298_v10  ;;  %v331_v56 = vunpack.c.h.b16 %v1283_v49  ;;  %v332_v57 = vrot.slane %v326_v52, 7  ;;  %v1551_v48 = vand.u32 127, %v54_v0 }
  0x30   :  { %v334_v58 = vrot.slane %v328_v11, 6  ;;  %v338_v59 = vrot.slane %v327_v53, 7  ;;  %v340_v60 = vrot.slane %v329_v54, 6  ;;  %v336_v61 = vrot.slane %v330_v55, 5 }
  0x31   :  { %v342_v62 = vrot.slane %v331_v56, 5  ;;  %v333_v63 = vsel %vm284_vm0, %v332_v57, %v324_v50  ;;  %vm466_vm7 = vcmp.lt.s32.totalorder %v1551_v48, 1  ;;  %vm657_vm8 = vcmp.lt.s32.totalorder %v1551_v48, 127 }
  0x32   :  { %v339_v2 = vsel %vm284_vm0, %v338_v59, %v325_v51  ;;  %v335_v3 = vsel %vm287_vm1, %v334_v58, %v333_v63  ;;  %v56_v51 = vadd.s32 128, %v1551_v48 }
  0x33   :  { %v341_v4 = vsel %vm287_vm1, %v340_v60, %v339_v2  ;;  %v337_v5 = vsel %vm290_vm2, %v336_v61, %v335_v3 }
  0x34   :  { %v343_v6 = vsel %vm290_vm2, %v342_v62, %v341_v4  ;;  %vm58_vm9 = vcmp.lt.s32.totalorder %v56_v51, 150  ;;  %v1368_v62 = vmov 0.0  }
  0x35   :  { %v344_v7 = vpack.c.b16 %v343_v6, %v337_v5  ;;  %v1568_v63 = vsel %vm58_vm9, 1.0, %v1368_v62 }
  0x36   :  { %v347_v8 = vld [vmem:[#allocation2] sm:$0x33] }
  0x37   :  { %v1239_v12 = vcombine.high %v347_v8, %v347_v8  ;;  %346 = vst.msk [vmem:[#allocation2 + $0x8] sm:$0x33] %vm1499_vm5, %v344_v7  ;;  %v1238_v9 = vcombine.low %v347_v8, %v347_v8 }
  0x39   :  { %1242 = vmatprep.subr.msk.bf16.mxu0 %vm300_vm3, %v1239_v12  ;;  %v365_v13 = vsel %vm300_vm3, %v1238_v9, 0 }
  0x3a   :  { %377 = vmatpush1.bf16.msra.mxu0 %v365_v13 }
  0x3b   :  { %1247 = vmatprep.subr.msk.bf16.mxu0 %vm300_vm3, %v1239_v12 }
  0x3d   :  { %1243 = vmatmul.mubr.msk.bf16.vlgmr.msra.gmra.mrb[0].mxu0 %vm360_vm6, %v349_v14 }
  0x3e   :  { %v348_v15 = vld [vmem:[#allocation2 + $0x8] sm:$0x33]  ;;  %477 = vmatpush1.bf16.msra.mxu0 %v365_v13  ;;  %508 = vmatprep.mubr.bf16.mxu0 %v1365_v1 }
  0x3f   :  { %v1241_v16 = vcombine.high %v348_v15, %v348_v15  ;;  %v1240_v17 = vcombine.low %v348_v15, %v348_v15  ;;  %1252 = vmatprep.subr.msk.bf16.mxu0 %vm300_vm3, %v1239_v12 }
  0x41   :  { %1244 = vmatprep.subr.msk.bf16.mxu1 %vm300_vm3, %v1241_v16  ;;  %v371_v18 = vsel %vm300_vm3, %v1240_v17, 0 }
  0x42   :  { %418 = vmatpush1.bf16.msra.mxu1 %v371_v18 }
  0x43   :  { %1249 = vmatprep.subr.msk.bf16.mxu1 %vm300_vm3, %v1241_v16 }
  0x45   :  { %1245 = vmatmul.mubr.msk.bf16.vlgmr.msra.gmra.mrb[0].mxu1 %vm360_vm6, %v349_v14  ;;  %1248 = vmatmul.mubr.msk.bf16.vlgmr.msra.gmra.mrb[4].mxu0 %vm360_vm6, %v1246_v19 }
  0x46   :  { %518 = vmatpush1.bf16.msra.mxu1 %v371_v18  ;;  %549 = vmatprep.mubr.bf16.mxu1 %v1365_v1 }
  0x47   :  { %1254 = vmatprep.subr.msk.bf16.mxu1 %vm300_vm3, %v1241_v16  ;;  %568 = vmatpush1.bf16.msra.mxu0 %v365_v13 }
  0x48   :  { %599 = vmatprep.mubr.bf16.mxu0 %v1365_v1 }
  0x4d   :  { %1250 = vmatmul.mubr.msk.bf16.vlgmr.msra.gmra.mrb[4].mxu1 %vm360_vm6, %v1246_v19  ;;  %1253 = vmatmul.mubr.msk.bf16.vlgmr.msra.gmra.mrb[8].mxu0 %vm360_vm6, %v1251_v20 }
  0x4e   :  { %609 = vmatpush1.bf16.msra.mxu1 %v371_v18  ;;  %640 = vmatprep.mubr.bf16.mxu1 %v1365_v1 }
  0x4f   :  { %844 = vmatprep.mubr.bf16.mxu0 %v1365_v1 }
  0x55   :  { %1255 = vmatmul.mubr.msk.bf16.vlgmr.msra.gmra.mrb[8].mxu1 %vm360_vm6, %v1251_v20 }
  0x56   :  { %885 = vmatprep.mubr.bf16.mxu1 %v1365_v1 }
  0x91   :  { %v674_v45 = vpop.permute.xlu0 %673 }
 0x110   :  { %v410_v21 = vpop.f32.mrb[0].mxu0 }
 0x111   :  { %458 = vrot.lane.b32.xlu0 %v410_v21, %s1366_s26  ;;  %v412_v22 = vpop.f32.mrb[1].mxu0 }
 0x112   :  { %460 = vrot.lane.b32.xlu1 %v412_v22, %s1366_s26  ;;  %v414_v23 = vpop.f32.mrb[2].mxu0 }
 0x113   :  { %v415_v24 = vpop.f32.mrb[3].mxu0 }
 0x118   :  { %v451_v25 = vpop.f32.mrb[0].mxu1  ;;  %v510_v26 = vpop.f32.mrb[4].mxu0 }
 0x119   :  { %v453_v27 = vpop.f32.mrb[1].mxu1  ;;  %v512_v28 = vpop.f32.mrb[5].mxu0 }
 0x11a   :  { %v455_v29 = vpop.f32.mrb[2].mxu1  ;;  %464 = vrot.lane.b32.xlu1 %v453_v27, %s1366_s26  ;;  %v514_v30 = vpop.f32.mrb[6].mxu0 }
 0x11b   :  { %v456_v31 = vpop.f32.mrb[3].mxu1  ;;  %v515_v32 = vpop.f32.mrb[7].mxu0 }
 0x120   :  { %v551_v33 = vpop.f32.mrb[4].mxu1  ;;  %v601_v34 = vpop.f32.mrb[8].mxu0 }
 0x121   :  { %v553_v35 = vpop.f32.mrb[5].mxu1  ;;  %v603_v36 = vpop.f32.mrb[9].mxu0 }
 0x122   :  { %v555_v37 = vpop.f32.mrb[6].mxu1  ;;  %651 = vrot.lane.b32.xlu0 %v603_v36, %s1367_s3  ;;  %v605_v38 = vpop.f32.mrb[10].mxu0 }
 0x123   :  { %v556_v39 = vpop.f32.mrb[7].mxu1  ;;  %v606_v40 = vpop.f32.mrb[11].mxu0 }
 0x126   :  { %649 = vrot.lane.b32.xlu0 %v601_v34, %s1367_s3  ;;  %v1100_v34 = vld [vmem:[%s1680_s8] sm:$0xff] }
 0x128   :  { %v642_v41 = vpop.f32.mrb[8].mxu1 }
 0x129   :  { %v644_v42 = vpop.f32.mrb[9].mxu1  ;;  %653 = vrot.lane.b32.xlu1 %v642_v41, %s1367_s3 }
 0x12a   :  { %v646_v43 = vpop.f32.mrb[10].mxu1  ;;  %462 = vrot.lane.b32.xlu0 %v451_v25, %s1366_s26 }
 0x12b   :  { %v647_v44 = vpop.f32.mrb[11].mxu1 }
 0x12e   :  { %655 = vrot.lane.b32.xlu0 %v644_v42, %s1367_s3 }
 0x183   :  { %v459_v47 = vpop.permute.xlu0 %458 }
 0x184   :  { %v461_v46 = vpop.permute.xlu1 %460 }
 0x185   :  { %v469_v52 = vsel %vm466_vm7, %v459_v47, %v461_v46 }
 0x186   :  { %v559_v54 = vadd.f32 %v512_v28, %v469_v52 }
 0x18c   :  { %v465_v10 = vpop.permute.xlu1 %464 }
 0x18d   :  { %v470_v50 = vsel %vm466_vm7, %v465_v10, %v459_v47 }
 0x18e   :  { %v558_v11 = vadd.f32 %v510_v26, %v470_v50 }
 0x194   :  { %v652_v49 = vpop.permute.xlu0 %651 }
 0x198   :  { %v650_v53 = vpop.permute.xlu0 %649 }
 0x199   :  { %v660_v0 = vsel %vm657_vm8, %v650_v53, %v652_v49 }
 0x19a   :  { %v662_v56 = vadd.f32 %v660_v0, %v558_v11 }
 0x19b   :  { %v654_v55 = vpop.permute.xlu1 %653 }
 0x19c   :  { %v659_v57 = vsel %vm657_vm8, %v652_v49, %v654_v55  ;;  %v463_v58 = vpop.permute.xlu0 %462  ;;  %v676_v3 = vadd.f32 %v674_v45, %v662_v56 }
 0x19d   :  { %v663_v59 = vadd.f32 %v659_v57, %v559_v54  ;;  %v467_v60 = vsel %vm466_vm7, %v463_v58, %v465_v10  ;;  %v468_v61 = vsel %vm466_vm7, %v461_v46, %v463_v58 }
 0x19e   :  { %v560_v4 = vadd.f32 %v551_v33, %v468_v61  ;;  %v561_v5 = vadd.f32 %v553_v35, %v467_v60  ;;  %v668_v60 = vld [vmem:[%s1677_s5 + $0x8] sm:$0xff] }
 0x19f   :  { %v677_v2 = vadd.f32 %v674_v45, %v663_v59  ;;  %v667_v59 = vld [vmem:[%s1677_s5] sm:$0xff] }
 0x1a0   :  { %v656_v6 = vpop.permute.xlu0 %655 }
 0x1a1   :  { %v658_v7 = vsel %vm657_vm8, %v654_v55, %v656_v6  ;;  %v661_v8 = vsel %vm657_vm8, %v656_v6, %v650_v53  ;;  %v679_v12 = vmul.f32 %v1568_v63, %v677_v2  ;;  %v669_v2 = vld [vmem:[%s1678_s6] sm:$0xff] }
 0x1a2   :  { %v664_v9 = vadd.f32 %v658_v7, %v560_v4  ;;  %v665_v13 = vadd.f32 %v661_v8, %v561_v5 }
 0x1a3   :  { %v680_v14 = vadd.f32 %v679_v12, %v676_v3 }
 0x1a4   :  { %v730_v15 = vadd.f32 %v674_v45, %v665_v13  ;;  %v729_v16 = vadd.f32 %v674_v45, %v664_v9 }
 0x1a5   :  { %681 = vadd.xlane.f32.xlu1 %v680_v14 }
 0x1a6   :  { %v732_v17 = vmul.f32 %v1568_v63, %v730_v15 }
 0x1a8   :  { %v733_v18 = vadd.f32 %v732_v17, %v729_v16 }
 0x1aa   :  { %734 = vadd.xlane.f32.xlu1 %v733_v18  ;;  %v1271_v18 = vld [vmem:[%s1679_s7 + $0x8] sm:$0xf] }
 0x232   :  { %v682_v19 = vpop.xlane.xlu1 %681 }
 0x233   :  { %v683_v20 = vrot.slane %v682_v19, 4 }
 0x235   :  { %v684_v21 = vadd.f32 %v683_v20, %v682_v19 }
 0x237   :  { %v685_v22 = vrot.slane %v684_v21, 2  ;;  %v735_v35 = vpop.xlane.xlu1 %734 }
 0x238   :  { %v736_v36 = vrot.slane %v735_v35, 4 }
 0x239   :  { %v686_v23 = vadd.f32 %v685_v22, %v684_v21 }
 0x23a   :  { %v737_v37 = vadd.f32 %v736_v36, %v735_v35 }
 0x23b   :  { %v687_v24 = vrot.slane %v686_v23, 1 }
 0x23c   :  { %v738_v38 = vrot.slane %v737_v37, 2 }
 0x23d   :  { %v688_v25 = vadd.f32 %v687_v24, %v686_v23 }
 0x23e   :  { %v739_v42 = vadd.f32 %v738_v38, %v737_v37 }
 0x23f   :  { %1286 = vpush %v688_v25 }
 0x240   :  { %v740_v45 = vrot.slane %v739_v42, 1 }
 0x242   :  { %v741_v10 = vadd.f32 %v740_v45, %v739_v42 }
 0x270   :  { %s1287_s27 = spop %1286 }
 0x271   :  { %v690_v26 = vstv %s1287_s27 }
 0x272   :  { %v691_v27 = vmul.f32 0.00083333335, %v690_v26 }
 0x274   :  { %v692_v28 = vsub.f32 %v676_v3, %v691_v27  ;;  %v693_v29 = vsub.f32 %v679_v12, %v691_v27  ;;  %v670_v3 = vld [vmem:[%s1678_s6 + $0x8] sm:$0xff] }
 0x276   :  { %v695_v30 = vmul.f32 %v1568_v63, %v693_v29  ;;  %v696_v31 = vmul.f32 %v692_v28, %v692_v28 }
 0x278   :  { %v697_v32 = vmul.f32 %v695_v30, %v695_v30 }
 0x27a   :  { %v698_v33 = vadd.f32 %v697_v32, %v696_v31 }
 0x27c   :  { %699 = vadd.xlane.f32.xlu0 %v698_v33 }
 0x292   :  { %1107 = vperm.xlu0 %1310, %v1100_v34  }
 0x309   :  { %v700_v39 = vpop.xlane.xlu0 %699 }
 0x30a   :  { %v701_v40 = vrot.slane %v700_v39, 4 }
 0x30c   :  { %v702_v41 = vadd.f32 %v701_v40, %v700_v39 }
 0x30e   :  { %v703_v43 = vrot.slane %v702_v41, 2 }
 0x310   :  { %v704_v44 = vadd.f32 %v703_v43, %v702_v41 }
 0x312   :  { %v705_v46 = vrot.slane %v704_v44, 1 }
 0x314   :  { %v706_v47 = vadd.f32 %v705_v46, %v704_v44 }
 0x316   :  { %1288 = vpush %v706_v47 }
 0x317   :  { %1290 = vpush %v741_v10 }
 0x347   :  { %s1289_s30 = spop %1288 }
 0x348   :  { %v708_v49 = vstv %s1289_s30  ;;  %s1291_s8 = spop %1290 }
 0x349   :  { %v709_v50 = vmul.f32 0.00083333335, %v708_v49  ;;  %v743_v51 = vstv %s1291_s8 }
 0x34a   :  { %v744_v52 = vmul.f32 0.00083333335, %v743_v51 }
 0x34b   :  { %v710_v53 = vadd.f32 1e-05, %v709_v50 }
 0x34c   :  { %v745_v11 = vsub.f32 %v729_v16, %v744_v52  ;;  %v746_v0 = vsub.f32 %v732_v17, %v744_v52  ;;  %v784_v16 = vld [vmem:[%s1679_s7] sm:$0xf]  ;;  %v1266_v17 = vld [vmem:[%s1679_s7 + $0x4] sm:$0xf] }
 0x34d   :  { %1314 = vrsqrt.f32 %v710_v53 }
 0x34e   :  { %v748_v54 = vmul.f32 %v1568_v63, %v746_v0  ;;  %v749_v55 = vmul.f32 %v745_v11, %v745_v11 }
 0x350   :  { %v750_v56 = vmul.f32 %v748_v54, %v748_v54 }
 0x352   :  { %v751_v57 = vadd.f32 %v750_v56, %v749_v55 }
 0x354   :  { %752 = vadd.xlane.f32.xlu1 %v751_v57 }
 0x357   :  { %v1315_v58 = vpop.eup %1314 }
 0x358   :  { %v712_v61 = vmul.f32 %v1315_v58, %v692_v28  ;;  %v713_v62 = vmul.f32 %v1315_v58, %v695_v30 }
 0x35a   :  { %v714_v4 = vmul.f32 %v712_v61, %v667_v59  ;;  %v715_v5 = vmul.f32 %v713_v62, %v668_v60 }
 0x35c   :  { %v716_v6 = vadd.f32 %v714_v4, %v669_v2  ;;  %v717_v7 = vadd.f32 %v715_v5, %v670_v3  ;;  %v1108_v5 = vpop.permute.xlu0 %1107 }
 0x35e   :  { %v718_v8 = vmax.f32 %v716_v6, 0.0  ;;  %v719_v12 = vmax.f32 %v717_v7, 0.0 }
 0x360   :  { %v1284_v9 = vpack.c.bf16 %v719_v12, %v718_v8  ;;  %v1322_v13 = vpack.c.bf16 %v719_v12, %v719_v12  ;;  %v1323_v14 = vpack.c.bf16 %v718_v8, %v718_v8 }
 0x362   :  { %728 = vst [vmem:[#allocation2] sm:$0xff] %v1284_v9  ;;  %1262 = vmatprep.subr.msk.bf16.mxu0 %vm799_vm10, %v1322_v13  ;;  %v801_v15 = vsel %vm799_vm10, %v1323_v14, 0 }
 0x363   :  { %813 = vmatpush1.bf16.msra.mxu0 %v801_v15 }
 0x364   :  { %1267 = vmatprep.subr.msk.bf16.mxu0 %vm799_vm10, %v1322_v13 }
 0x366   :  { %1263 = vmatmul.mubr.msk.bf16.vlgmr.msra.gmra.mrb[12].mxu0 %vm795_vm11, %v784_v16 }
 0x367   :  { %912 = vmatpush1.bf16.msra.mxu0 %v801_v15  ;;  %943 = vmatprep.mubr.bf16.mxu0 %v1365_v1 }
 0x368   :  { %1272 = vmatprep.subr.msk.bf16.mxu0 %vm799_vm10, %v1322_v13 }
 0x36e   :  { %1268 = vmatmul.mubr.msk.bf16.vlgmr.msra.gmra.mrb[16].mxu0 %vm795_vm11, %v1266_v17 }
 0x36f   :  { %1003 = vmatpush1.bf16.msra.mxu0 %v801_v15  ;;  %1034 = vmatprep.mubr.bf16.mxu0 %v1365_v1 }
 0x376   :  { %1273 = vmatmul.mubr.msk.bf16.vlgmr.msra.gmra.mrb[20].mxu0 %vm795_vm11, %v1271_v18 }
 0x3e1   :  { %v753_v19 = vpop.xlane.xlu1 %752 }
 0x3e2   :  { %v754_v20 = vrot.slane %v753_v19, 4 }
 0x3e4   :  { %v755_v21 = vadd.f32 %v754_v20, %v753_v19 }
 0x3e6   :  { %v756_v22 = vrot.slane %v755_v21, 2 }
 0x3e8   :  { %v757_v23 = vadd.f32 %v756_v22, %v755_v21 }
 0x3ea   :  { %v758_v24 = vrot.slane %v757_v23, 1 }
 0x3ec   :  { %v759_v25 = vadd.f32 %v758_v24, %v757_v23 }
 0x3ee   :  { %1292 = vpush %v759_v25 }
 0x41f   :  { %s1293_s0 = spop %1292 }
 0x420   :  { %v761_v26 = vstv %s1293_s0 }
 0x421   :  { %v762_v27 = vmul.f32 0.00083333335, %v761_v26 }
 0x423   :  { %v763_v28 = vadd.f32 1e-05, %v762_v27 }
 0x425   :  { %1316 = vrsqrt.f32 %v763_v28 }
 0x42f   :  { %v1317_v29 = vpop.eup %1316 }
 0x430   :  { %v765_v30 = vmul.f32 %v1317_v29, %v745_v11  ;;  %v766_v31 = vmul.f32 %v1317_v29, %v748_v54 }
 0x432   :  { %v767_v32 = vmul.f32 %v765_v30, %v667_v59  ;;  %v768_v33 = vmul.f32 %v766_v31, %v668_v60 }
 0x434   :  { %v769_v34 = vadd.f32 %v767_v32, %v669_v2  ;;  %v770_v35 = vadd.f32 %v768_v33, %v670_v3 }
 0x436   :  { %v771_v36 = vmax.f32 %v769_v34, 0.0  ;;  %v772_v37 = vmax.f32 %v770_v35, 0.0 }
 0x438   :  { %v1285_v38 = vpack.c.bf16 %v772_v37, %v771_v36  ;;  %v1324_v39 = vpack.c.bf16 %v772_v37, %v772_v37  ;;  %v1325_v40 = vpack.c.bf16 %v771_v36, %v771_v36 }
 0x439   :  { %v846_v41 = vpop.f32.mrb[12].mxu0 }
 0x43a   :  { %781 = vst [vmem:[#allocation2 + $0x8] sm:$0xff] %v1285_v38  ;;  %1264 = vmatprep.subr.msk.bf16.mxu1 %vm799_vm10, %v1324_v39  ;;  %v807_v42 = vsel %vm799_vm10, %v1325_v40, 0  ;;  %894 = vrot.lane.b32.xlu1 %v846_v41, %s1366_s26  ;;  %v848_v43 = vpop.f32.mrb[13].mxu0 }
 0x43b   :  { %854 = vmatpush1.bf16.msra.mxu1 %v807_v42  ;;  %v850_v44 = vpop.f32.mrb[14].mxu0 }
 0x43c   :  { %1269 = vmatprep.subr.msk.bf16.mxu1 %vm799_vm10, %v1324_v39  ;;  %v851_v45 = vpop.f32.mrb[15].mxu0 }
 0x43e   :  { %1265 = vmatmul.mubr.msk.bf16.vlgmr.msra.gmra.mrb[12].mxu1 %vm795_vm11, %v784_v16  ;;  %896 = vrot.lane.b32.xlu1 %v848_v43, %s1366_s26 }
 0x43f   :  { %953 = vmatpush1.bf16.msra.mxu1 %v807_v42  ;;  %984 = vmatprep.mubr.bf16.mxu1 %v1365_v1 }
 0x440   :  { %1274 = vmatprep.subr.msk.bf16.mxu1 %vm799_vm10, %v1324_v39 }
 0x441   :  { %v945_v46 = vpop.f32.mrb[16].mxu0 }
 0x442   :  { %v947_v47 = vpop.f32.mrb[17].mxu0 }
 0x443   :  { %v949_v10 = vpop.f32.mrb[18].mxu0 }
 0x444   :  { %v950_v49 = vpop.f32.mrb[19].mxu0 }
 0x446   :  { %1270 = vmatmul.mubr.msk.bf16.vlgmr.msra.gmra.mrb[16].mxu1 %vm795_vm11, %v1266_v17 }
 0x447   :  { %1044 = vmatpush1.bf16.msra.mxu1 %v807_v42  ;;  %1075 = vmatprep.mubr.bf16.mxu1 %v1365_v1 }
 0x449   :  { %v1036_v50 = vpop.f32.mrb[20].mxu0 }
 0x44a   :  { %v1038_v51 = vpop.f32.mrb[21].mxu0 }
 0x44b   :  { %1086 = vrot.lane.b32.xlu1 %v1038_v51, %s1367_s3  ;;  %v1040_v52 = vpop.f32.mrb[22].mxu0 }
 0x44c   :  { %v1041_v53 = vpop.f32.mrb[23].mxu0 }
 0x44e   :  { %1275 = vmatmul.mubr.msk.bf16.vlgmr.msra.gmra.mrb[20].mxu1 %vm795_vm11, %v1271_v18 }
 0x44f   :  { %1084 = vrot.lane.b32.xlu1 %v1036_v50, %s1367_s3 }
 0x4ac   :  { %v895_v2 = vpop.permute.xlu1 %894 }
 0x4b0   :  { %v897_v3 = vpop.permute.xlu1 %896 }
 0x4b1   :  { %v904_v9 = vsel %vm466_vm7, %v895_v2, %v897_v3 }
 0x4b2   :  { %v994_v16 = vadd.f32 %v947_v47, %v904_v9 }
 0x4bd   :  { %v1087_v4 = vpop.permute.xlu1 %1086 }
 0x4c1   :  { %v1085_v6 = vpop.permute.xlu1 %1084 }
 0x4c2   :  { %v1094_v15 = vsel %vm657_vm8, %v1085_v6, %v1087_v4 }
 0x511   :  { %v887_v11 = vpop.f32.mrb[12].mxu1 }
 0x512   :  { %898 = vrot.lane.b32.xlu1 %v887_v11, %s1366_s26  ;;  %v889_v0 = vpop.f32.mrb[13].mxu1 }
 0x513   :  { %900 = vrot.lane.b32.xlu0 %v889_v0, %s1366_s26  ;;  %v891_v54 = vpop.f32.mrb[14].mxu1 }
 0x514   :  { %v892_v55 = vpop.f32.mrb[15].mxu1 }
 0x519   :  { %v986_v56 = vpop.f32.mrb[16].mxu1 }
 0x51a   :  { %v988_v1 = vpop.f32.mrb[17].mxu1 }
 0x51b   :  { %v990_v57 = vpop.f32.mrb[18].mxu1 }
 0x51c   :  { %v991_v58 = vpop.f32.mrb[19].mxu1 }
 0x521   :  { %v1077_v59 = vpop.f32.mrb[20].mxu1 }
 0x522   :  { %1088 = vrot.lane.b32.xlu0 %v1077_v59, %s1367_s3  ;;  %v1079_v60 = vpop.f32.mrb[21].mxu1 }
 0x523   :  { %1090 = vrot.lane.b32.xlu1 %v1079_v60, %s1367_s3  ;;  %v1081_v61 = vpop.f32.mrb[22].mxu1 }
 0x524   :  { %v1082_v62 = vpop.f32.mrb[23].mxu1 }
 0x584   :  { %v899_v8 = vpop.permute.xlu1 %898 }
 0x585   :  { %v901_v7 = vpop.permute.xlu0 %900  ;;  %v903_v18 = vsel %vm466_vm7, %v897_v3, %v899_v8 }
 0x586   :  { %v905_v12 = vsel %vm466_vm7, %v901_v7, %v895_v2  ;;  %v902_v13 = vsel %vm466_vm7, %v899_v8, %v901_v7  ;;  %v995_v27 = vadd.f32 %v986_v56, %v903_v18 }
 0x587   :  { %v993_v14 = vadd.f32 %v945_v46, %v905_v12  ;;  %v996_v19 = vadd.f32 %v988_v1, %v902_v13 }
 0x589   :  { %v1096_v22 = vadd.f32 %v1094_v15, %v993_v14  ;;  %v1101_v15 = vld [vmem:[%s1681_s9] sm:$0xff] }
 0x58b   :  { %v1110_v31 = vadd.f32 %v1108_v5, %v1096_v22 }
 0x594   :  { %v1089_v17 = vpop.permute.xlu0 %1088 }
 0x595   :  { %v1093_v20 = vsel %vm657_vm8, %v1087_v4, %v1089_v17  ;;  %v1091_v21 = vpop.permute.xlu1 %1090 }
 0x596   :  { %v1097_v23 = vadd.f32 %v1093_v20, %v994_v16  ;;  %v1095_v24 = vsel %vm657_vm8, %v1091_v21, %v1085_v6  ;;  %v1092_v25 = vsel %vm657_vm8, %v1089_v17, %v1091_v21  ;;  %v1102_v16 = vld [vmem:[%s1681_s9 + $0x8] sm:$0xff] }
 0x597   :  { %v1099_v26 = vadd.f32 %v1095_v24, %v996_v19  ;;  %v1098_v30 = vadd.f32 %v1092_v25, %v995_v27  ;;  %v1103_v19 = vld [vmem:[%s1682_s10] sm:$0xff] }
 0x598   :  { %v1111_v28 = vadd.f32 %v1108_v5, %v1097_v23 }
 0x599   :  { %v1157_v29 = vadd.f32 %v1108_v5, %v1099_v26  ;;  %v1156_v35 = vadd.f32 %v1108_v5, %v1098_v30 }
 0x59a   :  { %v1113_v32 = vmul.f32 %v1568_v63, %v1111_v28 }
 0x59b   :  { %v1159_v34 = vmul.f32 %v1568_v63, %v1157_v29 }
 0x59c   :  { %v1114_v33 = vadd.f32 %v1113_v32, %v1110_v31 }
 0x59d   :  { %v1160_v36 = vadd.f32 %v1159_v34, %v1156_v35 }
 0x59e   :  { %1115 = vadd.xlane.f32.xlu0 %v1114_v33 }
 0x5a2   :  { %1161 = vadd.xlane.f32.xlu0 %v1160_v36 }
 0x62b   :  { %v1116_v37 = vpop.xlane.xlu0 %1115 }
 0x62c   :  { %v1117_v38 = vrot.slane %v1116_v37, 4 }
 0x62e   :  { %v1118_v39 = vadd.f32 %v1117_v38, %v1116_v37 }
 0x62f   :  { %v1162_v51 = vpop.xlane.xlu0 %1161 }
 0x630   :  { %v1119_v48 = vrot.slane %v1118_v39, 2  ;;  %v1163_v52 = vrot.slane %v1162_v51, 4 }
 0x632   :  { %v1120_v40 = vadd.f32 %v1119_v48, %v1118_v39  ;;  %v1164_v53 = vadd.f32 %v1163_v52, %v1162_v51 }
 0x634   :  { %v1121_v41 = vrot.slane %v1120_v40, 1  ;;  %v1165_v11 = vrot.slane %v1164_v53, 2 }
 0x636   :  { %v1122_v42 = vadd.f32 %v1121_v41, %v1120_v40  ;;  %v1166_v56 = vadd.f32 %v1165_v11, %v1164_v53 }
 0x638   :  { %1294 = vpush %v1122_v42  ;;  %v1167_v58 = vrot.slane %v1166_v56, 1 }
 0x63a   :  { %v1168_v61 = vadd.f32 %v1167_v58, %v1166_v56 }
 0x669   :  { %s1295_s7 = spop %1294 }
 0x66a   :  { %v1124_v43 = vstv %s1295_s7 }
 0x66b   :  { %v1125_v44 = vmul.f32 0.00083333335, %v1124_v43 }
 0x66d   :  { %v1126_v45 = vsub.f32 %v1110_v31, %v1125_v44  ;;  %v1127_v46 = vsub.f32 %v1113_v32, %v1125_v44 }
 0x66f   :  { %v1129_v47 = vmul.f32 %v1568_v63, %v1127_v46  ;;  %v1130_v10 = vmul.f32 %v1126_v45, %v1126_v45 }
 0x671   :  { %v1131_v49 = vmul.f32 %v1129_v47, %v1129_v47 }
 0x673   :  { %v1132_v50 = vadd.f32 %v1131_v49, %v1130_v10 }
 0x675   :  { %1133 = vadd.xlane.f32.xlu1 %v1132_v50 }
 0x702   :  { %v1134_v0 = vpop.xlane.xlu1 %1133 }
 0x703   :  { %v1135_v54 = vrot.slane %v1134_v0, 4 }
 0x705   :  { %v1136_v55 = vadd.f32 %v1135_v54, %v1134_v0 }
 0x707   :  { %v1137_v1 = vrot.slane %v1136_v55, 2 }
 0x709   :  { %v1138_v57 = vadd.f32 %v1137_v1, %v1136_v55 }
 0x70b   :  { %v1139_v59 = vrot.slane %v1138_v57, 1 }
 0x70d   :  { %v1140_v60 = vadd.f32 %v1139_v59, %v1138_v57 }
 0x70f   :  { %1296 = vpush %v1140_v60 }
 0x710   :  { %1298 = vpush %v1168_v61 }
 0x740   :  { %s1297_s22 = spop %1296 }
 0x741   :  { %v1142_v62 = vstv %s1297_s22  ;;  %s1299_s1 = spop %1298 }
 0x742   :  { %v1143_v2 = vmul.f32 0.00083333335, %v1142_v62  ;;  %v1170_v3 = vstv %s1299_s1 }
 0x743   :  { %v1171_v4 = vmul.f32 0.00083333335, %v1170_v3 }
 0x744   :  { %v1144_v5 = vadd.f32 1e-05, %v1143_v2 }
 0x745   :  { %v1172_v6 = vsub.f32 %v1156_v35, %v1171_v4  ;;  %v1173_v7 = vsub.f32 %v1159_v34, %v1171_v4 }
 0x746   :  { %1318 = vrsqrt.f32 %v1144_v5 }
 0x747   :  { %v1175_v8 = vmul.f32 %v1568_v63, %v1173_v7  ;;  %v1176_v12 = vmul.f32 %v1172_v6, %v1172_v6  ;;  %v1104_v63 = vld [vmem:[%s1682_s10 + $0x8] sm:$0xff]  ;;  %s1369_s10 = smov [#allocation7]  }
 0x748   :  { %s1208_s30 = sshll.u32 %s1369_s10, 4  ;;  %s1209_s30 = int_to_ptr.vmem [resolvable:$true] %s1208_s30 }
 0x749   :  { %v1177_v9 = vmul.f32 %v1175_v8, %v1175_v8  ;;  %s1338_s8 = scalar_lea.vmem %s1209_s30, 512  ;;  %p1343_p6 = scmp.lt.s32.totalorder %s1209_s30, %s1209_s30 }
 0x74a   :  { %p1339_p5 = scmp.ne.s32.totalorder %s1209_s30, %s1338_s8  ;;  %p1344_p7 = scmp.lt.s32.totalorder %s1338_s8, %s1338_s8 }
 0x74b   :  { %v1178_v13 = vadd.f32 %v1177_v9, %v1176_v12 }
 0x74c   :  { %p1345_p8 = por %p1344_p7, %p1343_p6 }
 0x74d   :  { %1179 = vadd.xlane.f32.xlu0 %v1178_v13 }
 0x74e   :  { %p1346_p9 = pnand %p1345_p8, %p1339_p5 }
 0x750   :  { %v1319_v14 = vpop.eup %1318 }
 0x751   :  { %v1146_v17 = vmul.f32 %v1319_v14, %v1126_v45  ;;  %v1147_v18 = vmul.f32 %v1319_v14, %v1129_v47 }
 0x753   :  { %v1148_v20 = vmul.f32 %v1146_v17, %v1101_v15  ;;  %v1149_v21 = vmul.f32 %v1147_v18, %v1102_v16 }
 0x755   :  { %v1150_v22 = vadd.f32 %v1148_v20, %v1103_v19  ;;  %v1151_v23 = vadd.f32 %v1149_v21, %v1104_v63 }
 0x757   :  { %v1152_v24 = vmax.f32 %v1150_v22, 0.0  ;;  %v1153_v25 = vmax.f32 %v1151_v23, 0.0 }
 0x759   :  { %1154 = vst [vmem:[#allocation7] sm:$0xff] %v1152_v24  ;;  %1155 = vst [vmem:[#allocation7 + $0x8] sm:$0xff] %v1153_v25 }
 0x7da   :  { %v1180_v26 = vpop.xlane.xlu0 %1179 }
 0x7db   :  { %v1181_v27 = vrot.slane %v1180_v26, 4 }
 0x7dd   :  { %v1182_v28 = vadd.f32 %v1181_v27, %v1180_v26 }
 0x7df   :  { %v1183_v29 = vrot.slane %v1182_v28, 2 }
 0x7e1   :  { %v1184_v30 = vadd.f32 %v1183_v29, %v1182_v28 }
 0x7e3   :  { %v1185_v31 = vrot.slane %v1184_v30, 1 }
 0x7e5   :  { %v1186_v32 = vadd.f32 %v1185_v31, %v1184_v30 }
 0x7e7   :  { %1300 = vpush %v1186_v32 }
 0x818   :  { %s1301_s9 = spop %1300 }
 0x819   :  { %v1188_v33 = vstv %s1301_s9 }
 0x81a   :  { %v1189_v34 = vmul.f32 0.00083333335, %v1188_v33 }
 0x81c   :  { %v1190_v35 = vadd.f32 1e-05, %v1189_v34 }
 0x81e   :  { %1320 = vrsqrt.f32 %v1190_v35 }
 0x828   :  { %v1321_v36 = vpop.eup %1320 }
 0x829   :  { %v1192_v37 = vmul.f32 %v1321_v36, %v1172_v6  ;;  %v1193_v38 = vmul.f32 %v1321_v36, %v1175_v8 }
 0x82b   :  { %v1194_v39 = vmul.f32 %v1192_v37, %v1101_v15  ;;  %v1195_v48 = vmul.f32 %v1193_v38, %v1102_v16 }
 0x82d   :  { %v1196_v40 = vadd.f32 %v1194_v39, %v1103_v19  ;;  %v1197_v41 = vadd.f32 %v1195_v48, %v1104_v63 }
 0x82f   :  { %v1198_v42 = vmax.f32 %v1196_v40, 0.0  ;;  %v1199_v43 = vmax.f32 %v1197_v41, 0.0 }
 0x831   :  { %1201 = vst [vmem:[#allocation7 + $0x10] sm:$0xff] %v1198_v42  ;;  %1202 = vst [vmem:[#allocation7 + $0x18] sm:$0xff] %v1199_v43 }
 0x832   :  { %1349 = shalt.err (!%p1346_p9)
}
 0x833   :  { %s1350_s14 = scalar_lea.hbm %s1683_s11, 512 }
 0x834   :  { %p1351_p10 = scmp.ne.s32.totalorder %s1683_s11, %s1350_s14  ;;  %p1354_p11 = scmp.lt.u32.totalorder %s1350_s14, %s1683_s11 }
 0x836   :  { %p1356_p12 = pnand %p1354_p11, %p1351_p10 }
 0x838   :  { %1359 = shalt.err (!%p1356_p12)
}
 0x839   :  { %s1370_s18 = smov 256   ;;  %s1371_s5 = smov 16  }
 0x83a   :  { %1214 = dma.vmem_to_hbm [thread:$0]  %s1209_s30, 512, %s1683_s11, [#allocation5], %s1370_s18, %s1370_s18, %s1371_s5  }
 0x83b   :  { %1362 = dma.done.wait [#allocation5], 512  }
 0x83c   :  { %1363 = vsyncadd [#allocation5], 4294966784 }
 0x83d   :  { %1218 = vsyncpa [#allocation5], 1 }
 0x83e   :  { %1219 = vsyncpa [#allocation6], 1 }

</bundles_post_ra>
